<compile_context>
chip_gen: v5e
topology: v5e:2x2
jax: 0.10.0
libtpu: 0.0.40
codegen_flags: <defaults>
</compile_context>

<pallas_src>
import functools

import jax
import jax.numpy as jnp
from jax.experimental import pallas as pl
from jax.experimental.pallas import tpu as pltpu


def _filtering_kernel(x_ref, w_ref, b_ref, ml_ref, out_ref,
                      *, pos_limit, neg_limit, force_pos):
    # x_ref:  (TM, H)     reps tile, native dtype (f32 or bf16)
    # w_ref:  (WR, H)     zero-padded head weight (classes in rows 0,1), reps dtype
    # b_ref:  (2,)        f32 bias scalars in SMEM
    # ml_ref: (1, TM)     int32 packed side stream: bit0 = mask, bit1 = (label > 0)
    # out_ref:(2, TM)     f32, row 0 = filter_score, row 1 = per-element CE

    # MXU: (WR, H) contracted with (TM, H) on H -> (WR, TM); classes live on
    # sublanes 0 and 1, rows are lane-dense.
    logits_t = jax.lax.dot_general(
        w_ref[...], x_ref[...],
        dimension_numbers=(((1,), (1,)), ((), ())),
        preferred_element_type=jnp.float32)

    # Bias only on the two live class rows (SMEM scalars -> VPU scalar add).
    s0 = logits_t[0:1, :] + b_ref[0]          # (1, TM) class-0 logit
    s1 = logits_t[1:2, :] + b_ref[1]          # (1, TM) class-1 logit

    ml = ml_ref[...]                          # (1, TM) int32
    mask = (ml & 1) > 0
    is_pos = (ml & 2) > 0

    # filter_score = s1 - s0, masked_fill(~mask, neg_limit), clamp, force_pos
    score = s1 - s0
    score = jnp.where(mask, score, jnp.float32(neg_limit))
    score = jnp.clip(score, jnp.float32(neg_limit), jnp.float32(pos_limit))
    if force_pos:
        score = jnp.where(is_pos, jnp.float32(pos_limit), score)

    # masked 2-class cross entropy: CE = logsumexp(s0, s1) - s_label
    m = jnp.maximum(s0, s1)
    lse = m + jnp.log(jnp.exp(s0 - m) + jnp.exp(s1 - m))
    s_lab = jnp.where(is_pos, s1, s0)
    ce = jnp.where(mask, lse - s_lab, jnp.float32(0.0))

    # Merged lane-dense output block: one output DMA per grid step.
    out_ref[0:1, :] = score
    out_ref[1:2, :] = ce


def _round_up(x, m):
    return ((x + m - 1) // m) * m


def _tpu_vmem_capacity_bytes():
    """Physical VMEM per TensorCore; conservative fallback if query fails."""
    try:
        info = pltpu.get_tpu_info()
        cap = int(getattr(info, "vmem_capacity_bytes", 0) or 0)
        if cap > 0:
            return cap
    except Exception:
        pass
    return 64 << 20  # v7x per-TC minimum; v5e/v6e have 128 MiB


# Headroom below the scoped limit for weight/bias/side-stream/output buffers
# and compiler-internal scratch.
_SIDE_OVERHEAD = 6 << 20


def _pick_tile(rows, hidden, itemsize, num_bufs=2):
    """Generation-aware row tile + scoped VMEM limit.

    Returns (tile_m, rows_pad, vmem_limit_bytes)."""
    vmem_cap = _tpu_vmem_capacity_bytes()
    # ~80% of physical VMEM: ~51 MiB on v7x (64 MiB), ~102 MiB on v5e/v6e (128 MiB).
    vmem_limit = int(vmem_cap * 0.80)
    x_budget = max(1 << 20, vmem_limit - _SIDE_OVERHEAD)
    per_row = max(1, hidden * itemsize)
    cap_rows = max(8, x_budget // (num_bufs * per_row))

    if rows < 1024 and rows <= cap_rows:
        # Single full-array block: exact shapes, no padding, no boundary block.
        return rows, rows, vmem_limit

    # Want >= 2 grid steps (shards the "parallel" axis across v7x's two
    # TensorCores) and a tile capped by the per-generation VMEM budget.
    tile_m = min(cap_rows, -(-rows // 2))
    tile_m = max(128, (int(tile_m) // 128) * 128)   # lane-dense side streams need %128
    rows_pad = _round_up(rows, tile_m)
    return tile_m, rows_pad, vmem_limit


def filtering_layer_forward(reps, masks, labels_b, weight, bias,
                            num_limit=10000.0, force_pos_cases=False,
                            reduction="sum", tile_m=None):
    """Pallas implementation of FilteringLayer.forward (dropout=None).

    reps:     (B, N, H) float (f32 or bf16; consumed in native dtype)
    masks:    (B, N)    bool
    labels_b: (B, N)    bool / int
    weight:   (2, H)    float  (nn.Linear(hidden, 2).weight)
    bias:     (2,)      float
    Returns (filter_score (B, N) f32, filter_loss) matching the torch module.
    """
    B, N, H = reps.shape
    rows = B * N
    pos_limit = float(num_limit)
    neg_limit = -float(num_limit)
    itemsize = jnp.dtype(reps.dtype).itemsize
    num_bufs = 2

    if tile_m is None:
        tile_m, rows_pad, vmem_limit = _pick_tile(rows, H, itemsize, num_bufs)
    else:
        vmem_limit = int(_tpu_vmem_capacity_bytes() * 0.80)
        if tile_m >= rows:
            tile_m, rows_pad = rows, rows
        else:
            tile_m = max(128, (int(tile_m) // 128) * 128)
            rows_pad = _round_up(rows, tile_m)

    # The double-buffered reps stream (plus small side buffers) must fit the
    # scoped VMEM limit on every generation (64 MiB physical on v7x).
    tile_bytes = num_bufs * tile_m * H * itemsize
    assert tile_bytes + _SIDE_OVERHEAD <= vmem_limit, (
        f"reps tile does not fit VMEM: {num_bufs} x {tile_m} x {H} x {itemsize}B "
        f"= {tile_bytes} B + overhead > limit {vmem_limit} B; pass a smaller tile_m")

    # Big activation stream: native dtype, no padding.  The boundary block on
    # the last step may contain undefined tail rows; they are killed by the
    # zero-padded mask stream and sliced off below.
    x2d = reps.reshape(rows, H)

    # Tiny head weight, zero-padded to the dtype's native sublane packing
    # (8 rows for f32, 16 for bf16, 32 for 1-byte dtypes) -> clean packed tile
    # on the MXU weight path.  Stays in reps' dtype; accumulation is f32.
    w_rows = max(8, 32 // itemsize)
    w_pad = jnp.zeros((w_rows, H), reps.dtype).at[:2, :].set(
        weight.astype(reps.dtype))
    # Bias as two f32 scalars in SMEM; added post-matmul on the live rows only.
    b_vec = bias.astype(jnp.float32).reshape(2)

    # Packed mask/label side stream: bit0 = mask, bit1 = positive label.
    ml = (masks.reshape(rows).astype(jnp.int32)
          + 2 * (labels_b.reshape(rows) > 0).astype(jnp.int32)).reshape(1, rows)
    if rows_pad != rows:
        ml = jnp.pad(ml, ((0, 0), (0, rows_pad - rows)))   # padded rows: mask=0

    grid = (rows_pad // tile_m,)
    kernel = functools.partial(_filtering_kernel,
                               pos_limit=pos_limit, neg_limit=neg_limit,
                               force_pos=bool(force_pos_cases))

    out2d = pl.pallas_call(
        kernel,
        grid=grid,
        in_specs=[
            pl.BlockSpec((tile_m, H), lambda i: (i, 0)),     # reps tile (streamed)
            pl.BlockSpec((w_rows, H), lambda i: (0, 0)),     # weight (resident)
            pl.BlockSpec(memory_space=pltpu.MemorySpace.SMEM),  # bias scalars
            pl.BlockSpec((1, tile_m), lambda i: (0, i)),     # packed mask|label
        ],
        out_specs=pl.BlockSpec((2, tile_m), lambda i: (0, i)),  # score | CE
        out_shape=jax.ShapeDtypeStruct((2, rows_pad), jnp.float32),
        compiler_params=pltpu.CompilerParams(
            dimension_semantics=("parallel",),
            vmem_limit_bytes=int(vmem_limit)),
    )(x2d, w_pad, b_vec, ml)

    filter_score = out2d[0, :rows].reshape(B, N)
    ce = out2d[1, :rows].reshape(B, N)

    if reduction == "sum":
        filter_loss = jnp.sum(ce)
    elif reduction == "ave":
        cnt = jnp.maximum(jnp.sum(masks.astype(jnp.float32)), 1.0)
        filter_loss = jnp.sum(ce) / cnt
    elif reduction == "none":
        filter_loss = ce
    else:
        raise ValueError(f"unknown reduction {reduction}")
    return filter_score, filter_loss


def _reference(reps, masks, labels_b, weight, bias, num_limit, force_pos):
    """Pure-JAX reference mirroring the torch module (dropout=None)."""
    logits = jnp.einsum("bnh,ch->bnc", reps.astype(jnp.float32),
                        weight.astype(jnp.float32)) + bias.astype(jnp.float32)
    score = logits[..., 1] - logits[..., 0]
    score = jnp.where(masks, score, -num_limit)
    score = jnp.clip(score, -num_limit, num_limit)
    if force_pos:
        score = jnp.where(labels_b > 0, num_limit, score)
    lse = jax.nn.logsumexp(logits, axis=-1)
    s_lab = jnp.where(labels_b > 0, logits[..., 1], logits[..., 0])
    ce = jnp.where(masks, lse - s_lab, 0.0)
    return score, jnp.sum(ce)


def _run_case(key, B, N, H, num_limit, force_pos, tile_m=None):
    k1, k2, k3, k4, k5 = jax.random.split(key, 5)
    reps = jax.random.normal(k1, (B, N, H), jnp.float32)
    masks = jax.random.bernoulli(k2, 0.8, (B, N))
    labels_b = jax.random.bernoulli(k3, 0.3, (B, N))
    bound = (6.0 / (H + 2)) ** 0.5            # Xavier-uniform for nn.Linear(H, 2)
    weight = jax.random.uniform(k4, (2, H), jnp.float32, -bound, bound)
    bias = 0.1 * jax.random.normal(k5, (2,), jnp.float32)

    score, loss = filtering_layer_forward(
        reps, masks, labels_b, weight, bias,
        num_limit=num_limit, force_pos_cases=force_pos,
        reduction="sum", tile_m=tile_m)
    jax.block_until_ready((score, loss))

    ref_score, ref_loss = _reference(reps, masks, labels_b, weight, bias,
                                     num_limit, force_pos=force_pos)
    assert jnp.allclose(score, ref_score, atol=1e-4, rtol=1e-4)
    assert jnp.allclose(loss, ref_loss, atol=1e-3, rtol=1e-4)


if __name__ == "__main__":
    key = jax.random.PRNGKey(0)
    k_a, k_b = jax.random.split(key)

    # Small case: single full-array block (grid == 1), shapes from the module.
    _run_case(k_a, B=2, N=8, H=32, num_limit=10000.0, force_pos=True)

    # Multi-step case with a partial (boundary) last reps block: rows = 510,
    # forced tile_m = 128 -> grid = 4, last block has 126 valid rows.
    _run_case(k_b, B=3, N=170, H=64, num_limit=10000.0, force_pos=False,
              tile_m=128)

    print("KERNEL_OK")
</pallas_src>

<mosaic_0001>
module attributes {stable_mosaic.version = 11 : i64} {
  func.func @_filtering_kernel(%arg0: i32, %arg1: memref<16x32xf32, #tpu.memory_space<vmem>>, %arg2: memref<8x32xf32, #tpu.memory_space<vmem>>, %arg3: memref<2xf32, #tpu.memory_space<smem>>, %arg4: memref<1x16xi32, #tpu.memory_space<vmem>>, %arg5: memref<2x16xf32, #tpu.memory_space<vmem>>) attributes {dimension_semantics = [#tpu.dimension_semantics<parallel>], iteration_bounds = array<i64: 1>, scalar_prefetch = 0 : i64, scratch_operands = 0 : i64, tpu.core_type = #tpu.core_type<tc>, window_params = [{transform_indices = @transform_0, window_bounds = array<i64: 16, 32>}, {pipeline_mode = #tpu.pipeline_mode<synchronous>, transform_indices = @transform_1, window_bounds = array<i64: 8, 32>}, {transform_indices = @transform_2, window_bounds = array<i64: 2>}, {transform_indices = @transform_3, window_bounds = array<i64: 1, 16>}, {transform_indices = @transform_4, window_bounds = array<i64: 2, 16>}]} {
    %c0 = arith.constant 0 : index
    %c0_0 = arith.constant 0 : index
    %0 = vector.load %arg2[%c0, %c0_0] : memref<8x32xf32, #tpu.memory_space<vmem>>, vector<8x32xf32>
    %c0_1 = arith.constant 0 : index
    %c0_2 = arith.constant 0 : index
    %1 = vector.load %arg1[%c0_1, %c0_2] : memref<16x32xf32, #tpu.memory_space<vmem>>, vector<16x32xf32>
    %cst = arith.constant dense<0.000000e+00> : vector<8x16xf32>
    %2 = tpu.matmul %0, %1, %cst {dimension_numbers = #tpu.dot_dimension_numbers<[1], [1], [0], [0], [0, 0, 1, 0], [], []>} : vector<8x32xf32>, vector<16x32xf32>, vector<8x16xf32> -> vector<8x16xf32>
    %3 = vector.extract_strided_slice %2 {offsets = [0, 0], sizes = [1, 16], strides = [1, 1]} : vector<8x16xf32> to vector<1x16xf32>
    %c0_3 = arith.constant 0 : index
    %4 = memref.load %arg3[%c0_3] : memref<2xf32, #tpu.memory_space<smem>>
    %5 = vector.broadcast %4 : f32 to vector<1x16xf32>
    %6 = arith.addf %3, %5 : vector<1x16xf32>
    %7 = vector.extract_strided_slice %2 {offsets = [1, 0], sizes = [1, 16], strides = [1, 1]} : vector<8x16xf32> to vector<1x16xf32>
    %c1 = arith.constant 1 : index
    %8 = memref.load %arg3[%c1] : memref<2xf32, #tpu.memory_space<smem>>
    %9 = vector.broadcast %8 : f32 to vector<1x16xf32>
    %10 = arith.addf %7, %9 : vector<1x16xf32>
    %c0_4 = arith.constant 0 : index
    %c0_5 = arith.constant 0 : index
    %11 = vector.load %arg4[%c0_4, %c0_5] : memref<1x16xi32, #tpu.memory_space<vmem>>, vector<1x16xi32>
    %c1_i32 = arith.constant 1 : i32
    %12 = vector.broadcast %c1_i32 : i32 to vector<1x16xi32>
    %13 = arith.andi %11, %12 : vector<1x16xi32>
    %c0_i32 = arith.constant 0 : i32
    %14 = vector.broadcast %c0_i32 : i32 to vector<1x16xi32>
    %15 = arith.cmpi sgt, %13, %14 : vector<1x16xi32>
    %c2_i32 = arith.constant 2 : i32
    %16 = vector.broadcast %c2_i32 : i32 to vector<1x16xi32>
    %17 = arith.andi %11, %16 : vector<1x16xi32>
    %c0_i32_6 = arith.constant 0 : i32
    %18 = vector.broadcast %c0_i32_6 : i32 to vector<1x16xi32>
    %19 = arith.cmpi sgt, %17, %18 : vector<1x16xi32>
    %20 = arith.subf %10, %6 : vector<1x16xf32>
    %cst_7 = arith.constant -1.000000e+04 : f32
    %21 = vector.broadcast %cst_7 : f32 to vector<1x16xf32>
    %22 = arith.select %15, %20, %21 : vector<1x16xi1>, vector<1x16xf32>
    %cst_8 = arith.constant -1.000000e+04 : f32
    %cst_9 = arith.constant 1.000000e+04 : f32
    %23 = vector.broadcast %cst_8 : f32 to vector<1x16xf32>
    %24 = arith.maximumf %23, %22 : vector<1x16xf32>
    %25 = vector.broadcast %cst_9 : f32 to vector<1x16xf32>
    %26 = arith.minimumf %25, %24 : vector<1x16xf32>
    %cst_10 = arith.constant 1.000000e+04 : f32
    %27 = vector.broadcast %cst_10 : f32 to vector<1x16xf32>
    %28 = arith.select %19, %27, %26 : vector<1x16xi1>, vector<1x16xf32>
    %29 = arith.maximumf %6, %10 : vector<1x16xf32>
    %30 = arith.subf %6, %29 : vector<1x16xf32>
    %31 = math.exp %30 : vector<1x16xf32>
    %32 = arith.subf %10, %29 : vector<1x16xf32>
    %33 = math.exp %32 : vector<1x16xf32>
    %34 = arith.addf %31, %33 : vector<1x16xf32>
    %35 = math.log %34 : vector<1x16xf32>
    %36 = arith.addf %29, %35 : vector<1x16xf32>
    %37 = arith.select %19, %10, %6 : vector<1x16xi1>, vector<1x16xf32>
    %38 = arith.subf %36, %37 : vector<1x16xf32>
    %cst_11 = arith.constant 0.000000e+00 : f32
    %39 = vector.broadcast %cst_11 : f32 to vector<1x16xf32>
    %40 = arith.select %15, %38, %39 : vector<1x16xi1>, vector<1x16xf32>
    %c0_12 = arith.constant 0 : index
    %c0_13 = arith.constant 0 : index
    %41 = vector.load %arg5[%c0_12, %c0_13] : memref<2x16xf32, #tpu.memory_space<vmem>>, vector<1x16xf32>
    tpu.vector_store %arg5[%c0_12, %c0_13], %28 {strides = array<i32>} : memref<2x16xf32, #tpu.memory_space<vmem>>, vector<1x16xf32>,
    %c1_14 = arith.constant 1 : index
    %c0_15 = arith.constant 0 : index
    %42 = vector.load %arg5[%c1_14, %c0_15] : memref<2x16xf32, #tpu.memory_space<vmem>>, vector<1x16xf32>
    tpu.vector_store %arg5[%c1_14, %c0_15], %40 {strides = array<i32>} : memref<2x16xf32, #tpu.memory_space<vmem>>, vector<1x16xf32>,
    return
  }
  func.func @transform_0(%arg0: i32) -> (i32, i32) {
    %c0_i32 = arith.constant 0 : i32
    %c0_i32_0 = arith.constant 0 : i32
    return %arg0, %c0_i32 : i32, i32
  }
  func.func @transform_1(%arg0: i32) -> (i32, i32) {
    %c0_i32 = arith.constant 0 : i32
    %c0_i32_0 = arith.constant 0 : i32
    %c0_i32_1 = arith.constant 0 : i32
    return %c0_i32, %c0_i32_0 : i32, i32
  }
  func.func @transform_2(%arg0: i32) -> i32 {
    %c0_i32 = arith.constant 0 : i32
    %c0_i32_0 = arith.constant 0 : i32
    return %c0_i32 : i32
  }
  func.func @transform_3(%arg0: i32) -> (i32, i32) {
    %c0_i32 = arith.constant 0 : i32
    %c0_i32_0 = arith.constant 0 : i32
    return %c0_i32, %arg0 : i32, i32
  }
  func.func @transform_4(%arg0: i32) -> (i32, i32) {
    %c0_i32 = arith.constant 0 : i32
    %c0_i32_0 = arith.constant 0 : i32
    return %c0_i32, %arg0 : i32, i32
  }
}

</mosaic_0001>

<bundles_post_ra>
// kernel: tpu_custom_call.1
= control target key start
LH: loop header
LB: loop body
LE: loop exit
PB: predicated region body
PF: predicated region fallthrough
CT: control target
= control target key end

     0   :  { %9 = vsyncpa [#allocation3], 0  ;;  %s340_s0 = inlined_call_operand.hbm [shape: f32[16,32], index: 0, kind: input, shape index: {}]   ;;  %s341_s1 = inlined_call_operand.hbm [shape: f32[8,32], index: 1, kind: input, shape index: {}]   ;;  %s342_s2 = inlined_call_operand.vmem [shape: f32[2], index: 2, kind: input, shape index: {}]   ;;  %s343_s3 = inlined_call_operand.vmem [shape: s32[1,16], index: 3, kind: input, shape index: {}]   ;;  %s344_s4 = inlined_call_operand.hbm [shape: f32[2,16], index: 4, kind: output, shape index: {}]  }
   0x1   :  { %10 = vsyncpa [#allocation7], 0 }
   0x2   :  { %11 = vsyncpa [#allocation5], 0 }
   0x3   :  { %12 = vsyncpa [#allocation4], 0  ;;  %s17_s17 = sshll.u32 %s340_s0, 4  ;;  %s276_s18 = smov [#allocation2]   ;;  %s18_s17 = int_to_ptr.hbm [resolvable:$true] %s17_s17 }
   0x4   :  { %s19_s19 = sshll.u32 %s276_s18, 4  ;;  %s31_s22 = sshll.u32 %s341_s1, 4  ;;  %s20_s19 = int_to_ptr.vmem [resolvable:$true] %s19_s19  ;;  %s32_s22 = int_to_ptr.hbm [resolvable:$true] %s31_s22 }
   0x5   :  { %s277_s23 = smov 128   ;;  %s278_s24 = smov 8  }
   0x6   :  { %25 = dma.hbm_to_vmem [thread:$0]  %s18_s17, 256, %s20_s19, [#allocation3], %s277_s23, %s277_s23, %s278_s24  }
   0x7   :  { %s279_s25 = smov [#allocation6]   ;;  %s42_s29 = sshll.u32 %s342_s2, 4  ;;  %s43_s29 = int_to_ptr.vmem [resolvable:$true] %s42_s29 }
   0x8   :  { %s33_s26 = sshll.u32 %s279_s25, 4  ;;  %s280_s0 = smov [#allocation8]   ;;  %s34_s26 = int_to_ptr.vmem [resolvable:$true] %s33_s26 }
   0x9   :  { %36 = dma.hbm_to_vmem [thread:$0]  %s32_s22, 128, %s34_s26, [#allocation7]  }
   0xa   :  { %45 = dma.vmem_to_smem %s43_s29, 16, %s280_s0, [#allocation5]  }
   0xb   :  { %268 = dma.done.wait [#allocation3], 256  }
   0xc   :  { %269 = vsyncadd [#allocation3], 4294967040 }
   0xd   :  { %270 = dma.done.wait [#allocation7], 128  }
   0xe   :  { %271 = vsyncadd [#allocation7], 4294967168 }
   0xf   :  { %272 = dma.done.wait [#allocation5], 16  }
  0x10   :  { %273 = vsyncadd [#allocation5], 4294967280 }
  0x11   :  { %60 = sfence }
  0x12   :  { %v63_v0 = vld [vmem:[#allocation2 + $0x8] sm:$0xff]  ;;  %vm64_vm0 = vcmask 261120   ;;  %v62_v1 = vld [vmem:[#allocation2] sm:$0xff]  ;;  %v61_v2 = vld [vmem:[#allocation6] sm:$0xff]  ;;  %s94_s1 = sld [smem:[#allocation8]]  ;;  %vm145_vm3 = vcmask 122880  }
  0x13   :  { %167 = vmatpush.xpose.msk.msra.mxu0 %vm64_vm0, %v63_v0  ;;  %s170_s2 = sld [smem:[#allocation8 + $0x1]]  ;;  %v100_v12 = vld [vmem:[%s343_s3] sm:$0x1]  ;;  %s281_s3 = smov [#allocation9]  }
  0x14   :  { %v101_v15 = vand.u32 1, %v100_v12  ;;  %v103_v19 = vand.u32 2, %v100_v12  ;;  %s153_s6 = sshll.u32 %s281_s3, 4  ;;  %s155_s9 = sshll.u32 %s344_s4, 4  ;;  %s154_s6 = int_to_ptr.vmem [resolvable:$true] %s153_s6  ;;  %s156_s9 = int_to_ptr.hbm [resolvable:$true] %s155_s9 }
  0x16   :  { %vm319_vm1 = vcmp.gt.s32.totalorder %v101_v15, 0  ;;  %vm323_vm2 = vcmp.gt.s32.totalorder %v103_v19, 0 }
  0x17   :  { %168 = vmatpush.xpose.msk.msra.mxu0 %vm64_vm0, %v62_v1 }
  0x18   :  { %v95_v3 = vstv %s94_s1 }
  0x19   :  { %v98_v4 = vstv %s170_s2 }
  0x1a   :  { %169 = vmatmul.msk.f32.vlgmr.msra.gmra.mxu0 %vm64_vm0, %v61_v2 }
  0x97   :  { %v91_v5 = vpop.f32.mrf.mxu0 }
  0x98   :  { %v96_v6 = vadd.f32 %v95_v3, %v91_v5  ;;  %v99_v7 = vadd.f32 %v98_v4, %v91_v5 }
  0x9a   :  { %v106_v8 = vrot.slane %v96_v6, 7  ;;  %v119_v9 = vrot.slane %v99_v7, 1 }
  0x9c   :  { %v108_v10 = vsub.f32 %v99_v7, %v106_v8  ;;  %v121_v11 = vmax.f32 %v96_v6, %v119_v9 }
  0x9e   :  { %110 = vst [vmem:[#allocation1] sm:$0xff] %v108_v10  ;;  %v122_v13 = vsub.f32 %v96_v6, %v121_v11  ;;  %v126_v14 = vrot.slane %v121_v11, 7 }
  0xa0   :  { %v128_v16 = vsub.f32 %v99_v7, %v126_v14  ;;  %v123_v17 = vmul.f32 1.442695, %v122_v13 }
  0xa2   :  { %v129_v18 = vmul.f32 1.442695, %v128_v16 }
  0xa4   :  { %178 = vpow2.f32 %v129_v18 }
  0xa5   :  { %v112_v21 = vld [vmem:[#allocation1 + $0x1] ss:$9 sm:$0xff]  ;;  %180 = vpow2.f32 %v123_v17 }
  0xa6   :  { %v114_v23 = vsel %vm319_vm1, %v112_v21, -10000.0  ;;  %138 = vst [vmem:[#allocation1] sm:$0xff] %v99_v7 }
  0xa7   :  { %v171_v24 = vclamps-f32 %v114_v23, 10000.0 }
  0xa9   :  { %v117_v25 = vsel %vm323_vm2, 10000.0, %v171_v24 }
  0xaa   :  { %v179_v26 = vpop.eup %178  ;;  %146 = vst.msk [vmem:[#allocation9] sm:$0x1] %vm145_vm3, %v117_v25 }
  0xab   :  { %v132_v27 = vrot.slane %v179_v26, 1  ;;  %v181_v28 = vpop.eup %180 }
  0xad   :  { %v134_v29 = vadd.f32 %v181_v28, %v132_v27  ;;  %v140_v32 = vld [vmem:[#allocation1 + $0x1] ss:$9 sm:$0xff] }
  0xae   :  { %v142_v34 = vsel %vm323_vm2, %v140_v32, %v96_v6 }
  0xaf   :  { %182 = vlog2.f32 %v134_v29 }
  0xb5   :  { %v183_v30 = vpop.eup %182 }
  0xb6   :  { %v136_v31 = vmul.f32 0.6931472, %v183_v30 }
  0xb8   :  { %v137_v33 = vadd.f32 %v136_v31, %v121_v11 }
  0xba   :  { %v143_v35 = vsub.f32 %v137_v33, %v142_v34 }
  0xbc   :  { %v144_v36 = vsel %vm319_vm1, %v143_v35, 0.0 }
  0xbd   :  { %147 = vst.msk [vmem:[#allocation9 + $0x1] sm:$0x1] %vm145_vm3, %v144_v36 }
  0xbe   :  { %158 = dma.vmem_to_hbm [thread:$0]  %s154_s6, 32, %s156_s9, [#allocation4]  }
  0xbf   :  { %274 = dma.done.wait [#allocation4], 32  }
  0xc0   :  { %275 = vsyncadd [#allocation4], 4294967264 }
  0xc1   :  { %163 = vsyncpa [#allocation3], 1 }
  0xc2   :  { %164 = vsyncpa [#allocation7], 1 }
  0xc3   :  { %165 = vsyncpa [#allocation4], 1 }
  0xc4   :  { %166 = vsyncpa [#allocation5], 1 }

</bundles_post_ra>
